<compile_context>
chip_gen: v7x
topology: tpu7x:2x2x1
jax: 0.10.0
libtpu: 0.0.40
codegen_flags: <defaults>
</compile_context>

<pallas_src>
import functools

import jax
import jax.numpy as jnp
import numpy as np
from jax.experimental import pallas as pl
from jax.experimental.pallas import tpu as pltpu

_MIB = 1024 * 1024


# --------------------------------------------------------------------------
# Kernels
# --------------------------------------------------------------------------
def _layernorm_f32(x_ref, gamma_ref, beta_ref, eps):
    """torch-style LayerNorm (unbiased std, eps added to std), f32 math."""
    x = x_ref[...].astype(jnp.float32)
    d = x.shape[-1]
    # Two-pass statistics: mean, then centered sum of squares (robust vs the
    # single-pass E[x^2]-E[x]^2 form, which is cancellation-prone).
    mean = jnp.sum(x, axis=-1, keepdims=True) * (1.0 / d)
    centered = x - mean
    var = jnp.sum(centered * centered, axis=-1, keepdims=True) * (1.0 / (d - 1))
    std = jnp.sqrt(var)
    inv = pl.reciprocal(std + eps, approx=False)          # EUP, exact
    scale = gamma_ref[...].astype(jnp.float32) * inv      # gamma folded in
    y = centered * scale + beta_ref[...].astype(jnp.float32)
    return x, y


def _sc_kernel_resident(x_ref, gamma_ref, beta_ref, w_ref, b_ref, o_ref, *, eps):
    """Single column block (W resident in VMEM, constant index_map).

    x_ref: (TM, D), w_ref: (D, D), o_ref: (TM, D).  No LN scratch: the LN
    result feeds the MXU directly (cast to the matmul dtype in-register).
    """
    x, y = _layernorm_f32(x_ref, gamma_ref, beta_ref, eps)
    z = jnp.dot(y.astype(w_ref.dtype), w_ref[...],
                preferred_element_type=jnp.float32)
    z = z + b_ref[...].astype(jnp.float32)
    # dropout (eval mode) == identity; residual add.
    o_ref[...] = (x + z).astype(o_ref.dtype)


def _sc_kernel_slab(x_ref, gamma_ref, beta_ref, w_ref, b_ref, o_ref, y_ref, *, eps):
    """Column-slab path for large D (W streamed as (D, TN) slabs).

    LayerNorm(x) is computed once per row tile (j == 0), cached in VMEM
    scratch in the matmul dtype, and reused by every N slab.
    """
    j = pl.program_id(1)
    tn = o_ref.shape[-1]

    @pl.when(j == 0)
    def _():
        _, y = _layernorm_f32(x_ref, gamma_ref, beta_ref, eps)
        y_ref[...] = y.astype(y_ref.dtype)

    z = jnp.dot(y_ref[...], w_ref[...], preferred_element_type=jnp.float32)
    z = z + b_ref[...].astype(jnp.float32)

    col0 = pl.multiple_of(j * tn, tn)                      # tn % 128 == 0 here
    x_res = x_ref[:, pl.ds(col0, tn)].astype(jnp.float32)
    o_ref[...] = (x_res + z).astype(o_ref.dtype)


# --------------------------------------------------------------------------
# Sizing helpers (generation aware)
# --------------------------------------------------------------------------
def _round_up(a, b):
    return (a + b - 1) // b * b


def _physical_vmem_bytes():
    try:
        return int(pltpu.get_tpu_info().vmem_capacity_bytes)
    except Exception:
        return 64 * _MIB  # conservative (v7x per-TensorCore)


def _choose_tiles(m, d, x_bytes, mm_bytes, budget):
    """Pick (tile_m, tile_n).  tile_n == d means 'W resident' (single block)."""
    small = 8 * d * 4  # gamma / beta / bias buffers (negligible, budgeted anyway)

    def tm_for(target):
        return _round_up(m, 8) if m <= target else target

    def fits(tm, tn, resident):
        w_buf = 2 * d * tn * mm_bytes          # conservative: 2 buffers even when resident
        x_buf = 2 * tm * d * x_bytes
        o_buf = 2 * tm * tn * x_bytes
        y_buf = 0 if resident else tm * d * mm_bytes
        return w_buf + x_buf + o_buf + y_buf + small <= budget

    # 1) Resident W (tn = d): weight DMA'd exactly once; largest row tile that fits.
    for target in (512, 256, 128):
        tm = tm_for(target)
        if fits(tm, d, True):
            return tm, d

    # 2) Column-slab W (lane-dense slabs need d % 128 == 0): amortize the
    #    re-streamed weight with a big row tile.
    if d % 128 == 0:
        for target in (1024, 512, 256):
            tm = tm_for(target)
            for tn in (512, 256, 128):
                if d % tn == 0 and fits(tm, tn, False):
                    return tm, tn

    # 3) Last resort: smallest resident config (vmem_limit is raised by caller).
    return tm_for(128), d


# --------------------------------------------------------------------------
# Wrapper
# --------------------------------------------------------------------------
def sublayer_connection(x, gamma, beta, w, b, *, eps=1e-6,
                        matmul_dtype=jnp.bfloat16):
    """x: [M, D] tokens-major; gamma/beta/b: [1, D]; w: [D, D].

    Pass `w` already cast to `matmul_dtype` (done once, outside the hot path);
    the wrapper only casts as a fallback.
    """
    m, d = x.shape
    assert d >= 2
    assert gamma.shape == (1, d) and beta.shape == (1, d)
    assert w.shape == (d, d) and b.shape == (1, d)

    if w.dtype != matmul_dtype:
        # Fallback only: callers should pre-cast once (see __main__) so repeated
        # invocations don't pay a d^2 HBM read/write for the cast each call.
        w = w.astype(matmul_dtype)

    x_bytes = x.dtype.itemsize
    mm_bytes = jnp.dtype(matmul_dtype).itemsize

    # Generation-aware VMEM budget: ~40 MiB on v7x (64 MiB physical),
    # ~104 MiB on v5e/v6e (128 MiB physical).
    phys_vmem = _physical_vmem_bytes()
    vmem_limit = max(32 * _MIB, phys_vmem - 24 * _MIB)
    planning_budget = vmem_limit - 8 * _MIB               # compiler scratch headroom

    tm, tn = _choose_tiles(m, d, x_bytes, mm_bytes, planning_budget)
    resident = (tn == d)

    # Ragged M: pad rows to a multiple of the row tile; extra rows are benign
    # (zero rows give finite LN output) and are sliced off at the end.
    m_pad = _round_up(m, tm)
    x_in = x if m_pad == m else jnp.pad(x, ((0, m_pad - m), (0, 0)))

    cost = pl.CostEstimate(
        flops=2 * m_pad * d * d + 10 * m_pad * d,
        transcendentals=2 * m_pad,                          # sqrt + reciprocal per row
        bytes_accessed=(2 * m_pad * d * x_bytes             # x in, out
                        + d * d * mm_bytes                  # W (once when resident)
                        + 3 * d * 4))

    if resident:
        kernel = functools.partial(_sc_kernel_resident, eps=eps)
        grid = (m_pad // tm,)
        in_specs = [
            pl.BlockSpec((tm, d), lambda i: (i, 0)),        # x
            pl.BlockSpec((1, d), lambda i: (0, 0)),         # gamma
            pl.BlockSpec((1, d), lambda i: (0, 0)),         # beta
            pl.BlockSpec((d, d), lambda i: (0, 0)),         # W (resident, DMA'd once)
            pl.BlockSpec((1, d), lambda i: (0, 0)),         # bias
        ]
        out_specs = pl.BlockSpec((tm, d), lambda i: (i, 0))
        scratch_shapes = ()
        dim_sem = ("parallel",)
    else:
        kernel = functools.partial(_sc_kernel_slab, eps=eps)
        grid = (m_pad // tm, d // tn)
        in_specs = [
            pl.BlockSpec((tm, d), lambda i, j: (i, 0)),     # x (resident over j)
            pl.BlockSpec((1, d), lambda i, j: (0, 0)),      # gamma
            pl.BlockSpec((1, d), lambda i, j: (0, 0)),      # beta
            pl.BlockSpec((d, tn), lambda i, j: (0, j)),     # W column slab
            pl.BlockSpec((1, tn), lambda i, j: (0, j)),     # bias slice
        ]
        out_specs = pl.BlockSpec((tm, tn), lambda i, j: (i, j))
        scratch_shapes = (pltpu.VMEM((tm, d), matmul_dtype),)   # cached LN(x)
        dim_sem = ("parallel", "arbitrary")

    out = pl.pallas_call(
        kernel,
        out_shape=jax.ShapeDtypeStruct((m_pad, d), x.dtype),
        grid=grid,
        in_specs=in_specs,
        out_specs=out_specs,
        scratch_shapes=scratch_shapes,
        cost_estimate=cost,
        compiler_params=pltpu.CompilerParams(
            dimension_semantics=dim_sem,
            vmem_limit_bytes=int(vmem_limit)),
    )(x_in, gamma, beta, w, b)

    return out if m_pad == m else out[:m]


# --------------------------------------------------------------------------
# Pure-JAX reference (torch-style LN, eval-mode dropout)
# --------------------------------------------------------------------------
def _reference(x, gamma, beta, w, b, eps=1e-6):
    x32 = x.astype(jnp.float32)
    mean = jnp.mean(x32, axis=-1, keepdims=True)
    centered = x32 - mean
    var = jnp.sum(centered * centered, axis=-1, keepdims=True) / (x.shape[-1] - 1)
    std = jnp.sqrt(var)
    y = gamma * centered / (std + eps) + beta
    z = y @ w.astype(jnp.float32) + b
    return (x32 + z).astype(x.dtype)


if __name__ == "__main__":
    key = jax.random.PRNGKey(0)
    B, S, D = 2, 8, 32          # batch, seq, hidden ("size" in the module)

    kx, kw = jax.random.split(key)
    x = jax.random.normal(kx, (B, S, D), dtype=jnp.float32)

    # LayerNorm params as in __init__: a_2 = ones, b_2 = zeros.
    gamma = jnp.ones((1, D), dtype=jnp.float32)
    beta = jnp.zeros((1, D), dtype=jnp.float32)

    # Deterministic sublayer (dense) weights.
    w = jax.random.normal(kw, (D, D), dtype=jnp.float32) / jnp.sqrt(D)
    b = jnp.zeros((1, D), dtype=jnp.float32)

    # Cast the matmul weight to bf16 ONCE, outside the hot path (per review:
    # avoid a d^2-sized HBM cast on every call).
    w_mm = w.astype(jnp.bfloat16)

    x2d = x.reshape(B * S, D)
    out2d = sublayer_connection(x2d, gamma, beta, w_mm, b)
    out = out2d.reshape(B, S, D)
    jax.block_until_ready(out)

    # Tolerance reflects bf16 matmul operands (f32 accumulation); LN math and
    # the reciprocal are exact f32.
    ref = _reference(x2d, gamma, beta, w, b).reshape(B, S, D)
    np.testing.assert_allclose(np.asarray(out), np.asarray(ref),
                               rtol=2e-2, atol=2e-2)
    print("KERNEL_OK")
</pallas_src>

<mosaic_0001>
module attributes {stable_mosaic.version = 11 : i64} {
  func.func @_sc_kernel_resident(%arg0: i32, %arg1: memref<16x32xf32, #tpu.memory_space<vmem>>, %arg2: memref<1x32xf32, #tpu.memory_space<vmem>>, %arg3: memref<1x32xf32, #tpu.memory_space<vmem>>, %arg4: memref<32x32xbf16, #tpu.memory_space<vmem>>, %arg5: memref<1x32xf32, #tpu.memory_space<vmem>>, %arg6: memref<16x32xf32, #tpu.memory_space<vmem>>) attributes {dimension_semantics = [#tpu.dimension_semantics<parallel>], iteration_bounds = array<i64: 1>, scalar_prefetch = 0 : i64, scratch_operands = 0 : i64, tpu.core_type = #tpu.core_type<tc>, window_params = [{transform_indices = @transform_0, window_bounds = array<i64: 16, 32>}, {pipeline_mode = #tpu.pipeline_mode<synchronous>, transform_indices = @transform_1, window_bounds = array<i64: 1, 32>}, {pipeline_mode = #tpu.pipeline_mode<synchronous>, transform_indices = @transform_2, window_bounds = array<i64: 1, 32>}, {pipeline_mode = #tpu.pipeline_mode<synchronous>, transform_indices = @transform_3, window_bounds = array<i64: 32, 32>}, {pipeline_mode = #tpu.pipeline_mode<synchronous>, transform_indices = @transform_4, window_bounds = array<i64: 1, 32>}, {transform_indices = @transform_5, window_bounds = array<i64: 16, 32>}]} {
    %c0 = arith.constant 0 : index
    %c0_0 = arith.constant 0 : index
    %0 = vector.load %arg1[%c0, %c0_0] : memref<16x32xf32, #tpu.memory_space<vmem>>, vector<16x32xf32>
    %cst = arith.constant dense<0.000000e+00> : vector<16xf32>
    %1 = vector.multi_reduction <add>, %0, %cst [1] : vector<16x32xf32> to vector<16xf32>
    %2 = vector.shape_cast %1 : vector<16xf32> to vector<16x1xf32>
    %cst_1 = arith.constant 3.125000e-02 : f32
    %3 = vector.broadcast %cst_1 : f32 to vector<16x1xf32>
    %4 = arith.mulf %2, %3 : vector<16x1xf32>
    %5 = vector.broadcast %4 : vector<16x1xf32> to vector<16x32xf32>
    %6 = arith.subf %0, %5 : vector<16x32xf32>
    %7 = arith.mulf %6, %6 : vector<16x32xf32>
    %cst_2 = arith.constant dense<0.000000e+00> : vector<16xf32>
    %8 = vector.multi_reduction <add>, %7, %cst_2 [1] : vector<16x32xf32> to vector<16xf32>
    %9 = vector.shape_cast %8 : vector<16xf32> to vector<16x1xf32>
    %cst_3 = arith.constant 0.0322580636 : f32
    %10 = vector.broadcast %cst_3 : f32 to vector<16x1xf32>
    %11 = arith.mulf %9, %10 : vector<16x1xf32>
    %12 = math.sqrt %11 : vector<16x1xf32>
    %cst_4 = arith.constant 9.99999997E-7 : f32
    %13 = vector.broadcast %cst_4 : f32 to vector<16x1xf32>
    %14 = arith.addf %12, %13 : vector<16x1xf32>
    %15 = tpu.reciprocal %14 : vector<16x1xf32> -> vector<16x1xf32>
    %c0_5 = arith.constant 0 : index
    %c0_6 = arith.constant 0 : index
    %16 = vector.load %arg2[%c0_5, %c0_6] : memref<1x32xf32, #tpu.memory_space<vmem>>, vector<1x32xf32>
    %17 = vector.broadcast %16 : vector<1x32xf32> to vector<16x32xf32>
    %18 = vector.broadcast %15 : vector<16x1xf32> to vector<16x32xf32>
    %19 = arith.mulf %17, %18 : vector<16x32xf32>
    %20 = arith.mulf %6, %19 : vector<16x32xf32>
    %c0_7 = arith.constant 0 : index
    %c0_8 = arith.constant 0 : index
    %21 = vector.load %arg3[%c0_7, %c0_8] : memref<1x32xf32, #tpu.memory_space<vmem>>, vector<1x32xf32>
    %22 = vector.broadcast %21 : vector<1x32xf32> to vector<16x32xf32>
    %23 = arith.addf %20, %22 : vector<16x32xf32>
    %24 = arith.truncf %23 : vector<16x32xf32> to vector<16x32xbf16>
    %c0_9 = arith.constant 0 : index
    %c0_10 = arith.constant 0 : index
    %25 = vector.load %arg4[%c0_9, %c0_10] : memref<32x32xbf16, #tpu.memory_space<vmem>>, vector<32x32xbf16>
    %cst_11 = arith.constant dense<0.000000e+00> : vector<16x32xf32>
    %26 = tpu.matmul %24, %25, %cst_11 {dimension_numbers = #tpu.dot_dimension_numbers<[1], [0], [0], [1], [0, 0, 1, 1], [], []>} : vector<16x32xbf16>, vector<32x32xbf16>, vector<16x32xf32> -> vector<16x32xf32>
    %c0_12 = arith.constant 0 : index
    %c0_13 = arith.constant 0 : index
    %27 = vector.load %arg5[%c0_12, %c0_13] : memref<1x32xf32, #tpu.memory_space<vmem>>, vector<1x32xf32>
    %28 = vector.broadcast %27 : vector<1x32xf32> to vector<16x32xf32>
    %29 = arith.addf %26, %28 : vector<16x32xf32>
    %30 = arith.addf %0, %29 : vector<16x32xf32>
    %c0_14 = arith.constant 0 : index
    %c0_15 = arith.constant 0 : index
    %31 = vector.load %arg6[%c0_14, %c0_15] : memref<16x32xf32, #tpu.memory_space<vmem>>, vector<16x32xf32>
    tpu.vector_store %arg6[%c0_14, %c0_15], %30 {strides = array<i32>} : memref<16x32xf32, #tpu.memory_space<vmem>>, vector<16x32xf32>,
    return
  }
  func.func @transform_0(%arg0: i32) -> (i32, i32) {
    %c0_i32 = arith.constant 0 : i32
    %c0_i32_0 = arith.constant 0 : i32
    return %arg0, %c0_i32 : i32, i32
  }
  func.func @transform_1(%arg0: i32) -> (i32, i32) {
    %c0_i32 = arith.constant 0 : i32
    %c0_i32_0 = arith.constant 0 : i32
    %c0_i32_1 = arith.constant 0 : i32
    return %c0_i32, %c0_i32_0 : i32, i32
  }
  func.func @transform_2(%arg0: i32) -> (i32, i32) {
    %c0_i32 = arith.constant 0 : i32
    %c0_i32_0 = arith.constant 0 : i32
    %c0_i32_1 = arith.constant 0 : i32
    return %c0_i32, %c0_i32_0 : i32, i32
  }
  func.func @transform_3(%arg0: i32) -> (i32, i32) {
    %c0_i32 = arith.constant 0 : i32
    %c0_i32_0 = arith.constant 0 : i32
    %c0_i32_1 = arith.constant 0 : i32
    return %c0_i32, %c0_i32_0 : i32, i32
  }
  func.func @transform_4(%arg0: i32) -> (i32, i32) {
    %c0_i32 = arith.constant 0 : i32
    %c0_i32_0 = arith.constant 0 : i32
    %c0_i32_1 = arith.constant 0 : i32
    return %c0_i32, %c0_i32_0 : i32, i32
  }
  func.func @transform_5(%arg0: i32) -> (i32, i32) {
    %c0_i32 = arith.constant 0 : i32
    %c0_i32_0 = arith.constant 0 : i32
    return %arg0, %c0_i32 : i32, i32
  }
}

</mosaic_0001>

<bundles_post_ra>
// kernel: tpu_custom_call.1
= control target key start
LH: loop header
LB: loop body
LE: loop exit
PB: predicated region body
PF: predicated region fallthrough
CT: control target
= control target key end

     0   :  { %10 = vsyncpa [#allocation3], 0  ;;  %s416_s0 = inlined_call_operand.hbm [shape: f32[16,32], index: 0, kind: input, shape index: {}]   ;;  %s417_s1 = inlined_call_operand.vmem [shape: f32[1,32], index: 1, kind: input, shape index: {}]   ;;  %s418_s2 = inlined_call_operand.vmem [shape: f32[1,32], index: 2, kind: input, shape index: {}]   ;;  %s419_s3 = inlined_call_operand.hbm [shape: bf16[32,32], index: 3, kind: input, shape index: {}]   ;;  %s420_s4 = inlined_call_operand.vmem [shape: f32[1,32], index: 4, kind: input, shape index: {}]   ;;  %s421_s5 = inlined_call_operand.hbm [shape: f32[16,32], index: 5, kind: output, shape index: {}]  }
   0x1   :  { %11 = vsyncpa [#allocation6], 0 }
   0x2   :  { %12 = vsyncpa [#allocation4], 0  ;;  %s309_s18 = smov [#allocation2]   ;;  %s237_s22 = scalar_lea.hbm %s416_s0, 256 }
   0x3   :  { %s18_s19 = sshll.u32 %s309_s18, 4  ;;  %p238_p0 = scmp.ne.s32.totalorder %s416_s0, %s237_s22  ;;  %s19_s19 = int_to_ptr.vmem [resolvable:$true] %s18_s19 }
   0x4   :  { %p241_p1 = scmp.lt.u32.totalorder %s237_s22, %s416_s0 }
   0x6   :  { %p243_p2 = pnand %p241_p1, %p238_p0 }
   0x8   :  { %246 = shalt.err (!%p243_p2)
}
   0x9   :  { %s247_s27 = scalar_lea.vmem %s19_s19, 256  ;;  %p252_p4 = scmp.lt.s32.totalorder %s19_s19, %s19_s19 }
   0xa   :  { %p248_p3 = scmp.ne.s32.totalorder %s19_s19, %s247_s27  ;;  %p253_p5 = scmp.lt.s32.totalorder %s247_s27, %s247_s27 }
   0xc   :  { %p254_p6 = por %p253_p5, %p252_p4 }
   0xe   :  { %p255_p7 = pnand %p254_p6, %p248_p3 }
  0x10   :  { %258 = shalt.err (!%p255_p7)
}
  0x11   :  { %s310_s28 = smov 128   ;;  %s311_s29 = smov 8  }
  0x12   :  { %24 = dma.hbm_to_vmem [thread:$0]  %s416_s0, 256, %s19_s19, [#allocation3], %s310_s28, %s310_s28, %s311_s29  }
  0x13   :  { %s312_s7 = smov [#allocation5]   ;;  %s259_s11 = scalar_lea.hbm %s419_s3, 256 }
  0x14   :  { %s34_s8 = sshll.u32 %s312_s7, 4  ;;  %p260_p8 = scmp.ne.s32.totalorder %s419_s3, %s259_s11  ;;  %s35_s8 = int_to_ptr.vmem [resolvable:$true] %s34_s8 }
  0x15   :  { %p263_p9 = scmp.lt.u32.totalorder %s259_s11, %s419_s3 }
  0x17   :  { %p265_p10 = pnand %p263_p9, %p260_p8 }
  0x19   :  { %268 = shalt.err (!%p265_p10)
}
  0x1a   :  { %s269_s16 = scalar_lea.vmem %s35_s8, 256  ;;  %p274_p12 = scmp.lt.s32.totalorder %s35_s8, %s35_s8 }
  0x1b   :  { %p270_p11 = scmp.ne.s32.totalorder %s35_s8, %s269_s16  ;;  %p275_p13 = scmp.lt.s32.totalorder %s269_s16, %s269_s16 }
  0x1d   :  { %p276_p0 = por %p275_p13, %p274_p12 }
  0x1f   :  { %p277_p1 = pnand %p276_p0, %p270_p11 }
  0x21   :  { %280 = shalt.err (!%p277_p1)
}
  0x22   :  { %s313_s0 = smov 64   ;;  %s314_s17 = smov 4  }
  0x23   :  { %40 = dma.hbm_to_vmem [thread:$0]  %s419_s3, 256, %s35_s8, [#allocation6], %s313_s0, %s313_s0, %s314_s17  }
  0x24   :  { %303 = dma.done.wait [#allocation3], 256  }
  0x25   :  { %304 = vsyncadd [#allocation3], 4294967040 }
  0x26   :  { %305 = dma.done.wait [#allocation6], 256  }
  0x27   :  { %306 = vsyncadd [#allocation6], 4294967040  ;;  %vm52_vm0 = vcmask 261120   ;;  %v375_v0 = vld [vmem:[#allocation2] sm:$0xff]  ;;  %v377_v1 = vld [vmem:[#allocation2 + $0x8] sm:$0xff]  ;;  %v315_v15 = vmov 0.0  }
  0x28   :  { %v53_v2 = vsel %vm52_vm0, %v375_v0, 0.0  ;;  %v56_v3 = vsel %vm52_vm0, %v377_v1, 0.0  ;;  %v227_v14 = vld [vmem:[#allocation5] sm:$0xff]   ;;  %210 = vmatprep.subr.bf16.mxu0 %v315_v15  ;;  %vm316_vm1 = vmmov 0   ;;  %v228_v16 = vld [vmem:[#allocation5 + $0x8] sm:$0xff]  }
  0x29   :  { %54 = vadd.xlane.f32.xlu0 %v53_v2  ;;  %214 = vmatprep.mubr.msk.bf16.mxu0 %vm316_vm1, %v315_v15  ;;  %v201_v33 = vld [vmem:[%s417_s1] ss:$0 sm:$0xff]  ;;  %s317_s1 = smov [#allocation7]  }
  0x2a   :  { %211 = vmatpush3.bf16.msra.mxu0 %v227_v14  ;;  %v202_v39 = vld [vmem:[%s418_s2] ss:$0 sm:$0xff]  ;;  %s188_s25 = sshll.u32 %s317_s1, 4  ;;  %s189_s25 = int_to_ptr.vmem [resolvable:$true] %s188_s25 }
  0x2b   :  { %212 = vmatprep.subr.bf16.mxu0 %v315_v15  ;;  %v203_v44 = vld [vmem:[%s420_s4] ss:$0 sm:$0xff]  ;;  %s281_s2 = scalar_lea.vmem %s189_s25, 256  ;;  %p286_p3 = scmp.lt.s32.totalorder %s189_s25, %s189_s25 }
  0x2c   :  { %p282_p2 = scmp.ne.s32.totalorder %s189_s25, %s281_s2  ;;  %p287_p4 = scmp.lt.s32.totalorder %s281_s2, %s281_s2 }
  0x2d   :  { %57 = vadd.xlane.f32.xlu0 %v56_v3 }
  0x2e   :  { %213 = vmatpush3.bf16.msra.mxu0 %v228_v16  ;;  %p288_p5 = por %p287_p4, %p286_p3 }
  0x30   :  { %p289_p6 = pnand %p288_p5, %p282_p2 }
  0xb6   :  { %v55_v4 = vpop.xlane.xlu0 %54 }
  0xb7   :  { %v59_v5 = vmul.f32 0.03125, %v55_v4 }
  0xb9   :  { %v61_v6 = vsub.f32 %v375_v0, %v59_v5 }
  0xba   :  { %v58_v7 = vpop.xlane.xlu0 %57 }
  0xbb   :  { %v60_v8 = vmul.f32 0.03125, %v58_v7  ;;  %v63_v9 = vmul.f32 %v61_v6, %v61_v6 }
  0xbd   :  { %v62_v10 = vsub.f32 %v377_v1, %v60_v8  ;;  %v65_v11 = vsel %vm52_vm0, %v63_v9, 0.0 }
  0xbe   :  { %66 = vadd.xlane.f32.xlu1 %v65_v11 }
  0xbf   :  { %v64_v12 = vmul.f32 %v62_v10, %v62_v10 }
  0xc1   :  { %v68_v13 = vsel %vm52_vm0, %v64_v12, 0.0 }
  0xc2   :  { %69 = vadd.xlane.f32.xlu1 %v68_v13 }
 0x14b   :  { %v67_v17 = vpop.xlane.xlu1 %66 }
 0x14c   :  { %v71_v18 = vmul.f32 0.032258064, %v67_v17 }
 0x14e   :  { %229 = vrsqrt.f32 %v71_v18  ;;  %vm75_vm2 = vcmp.eq.f32.partialorder %v71_v18, inf  ;;  %v78_v23 = vand.u32 2147483648, %v71_v18  ;;  %vm77_vm3 = vcmp.eq.f32.partialorder %v71_v18, 0.0 }
 0x14f   :  { %v70_v19 = vpop.xlane.xlu1 %69 }
 0x150   :  { %v72_v20 = vmul.f32 0.032258064, %v70_v19 }
 0x152   :  { %231 = vrsqrt.f32 %v72_v20  ;;  %vm82_vm4 = vcmp.eq.f32.partialorder %v72_v20, inf  ;;  %v85_v29 = vand.u32 2147483648, %v72_v20  ;;  %vm84_vm5 = vcmp.eq.f32.partialorder %v72_v20, 0.0 }
 0x158   :  { %v230_v21 = vpop.eup %229 }
 0x159   :  { %v74_v22 = vmul.f32 %v230_v21, %v71_v18 }
 0x15b   :  { %v76_v24 = vsel %vm75_vm2, %v71_v18, %v74_v22 }
 0x15c   :  { %v232_v25 = vpop.eup %231  ;;  %v79_v26 = vsel %vm77_vm3, %v78_v23, %v76_v24 }
 0x15d   :  { %v87_v27 = vadd.f32 1e-06, %v79_v26  ;;  %v81_v28 = vmul.f32 %v232_v25, %v72_v20 }
 0x15f   :  { %233 = vrcp.f32 %v87_v27  ;;  %v83_v30 = vsel %vm82_vm4, %v72_v20, %v81_v28 }
 0x160   :  { %v86_v31 = vsel %vm84_vm5, %v85_v29, %v83_v30 }
 0x161   :  { %v88_v32 = vadd.f32 1e-06, %v86_v31 }
 0x163   :  { %235 = vrcp.f32 %v88_v32 }
 0x169   :  { %v234_v34 = vpop.eup %233 }
 0x16a   :  { %v98_v35 = vmul.f32 %v234_v34, %v201_v33 }
 0x16c   :  { %v100_v38 = vmul.f32 %v98_v35, %v61_v6 }
 0x16d   :  { %v236_v36 = vpop.eup %235 }
 0x16e   :  { %v99_v37 = vmul.f32 %v236_v36, %v201_v33  ;;  %v109_v41 = vadd.f32 %v202_v39, %v100_v38 }
 0x170   :  { %v101_v40 = vmul.f32 %v99_v37, %v62_v10 }
 0x172   :  { %v110_v42 = vadd.f32 %v202_v39, %v101_v40 }
 0x174   :  { %v111_v43 = vpack.c.bf16 %v110_v42, %v109_v41 }
 0x176   :  { %215 = vmatmul.mubr.msk.bf16.vlgmr.msra.gmra.mrb[0].mxu0 %vm52_vm0, %v111_v43 }
 0x249   :  { %v172_v45 = vpop.f32.mrb[0].mxu0 }
 0x24a   :  { %v173_v46 = vadd.f32 %v203_v44, %v172_v45  ;;  %v216_v47 = vpop.f32.mrb[1].mxu0 }
 0x24b   :  { %v175_v48 = vpop.f32.mrb[2].mxu0 }
 0x24c   :  { %v179_v49 = vadd.f32 %v173_v46, %v375_v0  ;;  %v176_v50 = vadd.f32 %v203_v44, %v175_v48  ;;  %v217_v51 = vpop.f32.mrb[3].mxu0 }
 0x24e   :  { %181 = vst.msk [vmem:[#allocation7] sm:$0xff] %vm52_vm0, %v179_v49  ;;  %v180_v52 = vadd.f32 %v176_v50, %v377_v1 }
 0x250   :  { %182 = vst.msk [vmem:[#allocation7 + $0x8] sm:$0xff] %vm52_vm0, %v180_v52 }
 0x251   :  { %292 = shalt.err (!%p289_p6)
}
 0x252   :  { %s293_s27 = scalar_lea.hbm %s421_s5, 256 }
 0x253   :  { %p294_p7 = scmp.ne.s32.totalorder %s421_s5, %s293_s27  ;;  %p297_p8 = scmp.lt.u32.totalorder %s293_s27, %s421_s5 }
 0x255   :  { %p299_p9 = pnand %p297_p8, %p294_p7 }
 0x257   :  { %302 = shalt.err (!%p299_p9)
}
 0x258   :  { %194 = dma.vmem_to_hbm [thread:$0]  %s189_s25, 256, %s421_s5, [#allocation4], %s310_s28, %s310_s28, %s311_s29  }
 0x259   :  { %307 = dma.done.wait [#allocation4], 256  }
 0x25a   :  { %308 = vsyncadd [#allocation4], 4294967040 }
 0x25b   :  { %198 = vsyncpa [#allocation3], 1 }
 0x25c   :  { %199 = vsyncpa [#allocation6], 1 }
 0x25d   :  { %200 = vsyncpa [#allocation4], 1 }

</bundles_post_ra>
